<compile_context>
chip_gen: v7x
topology: tpu7x:2x2x1
jax: 0.10.0
libtpu: 0.0.40
codegen_flags: <defaults>
</compile_context>

<pallas_src>
import functools

import jax
import jax.numpy as jnp
from jax.experimental import pallas as pl
from jax.experimental.pallas import tpu as pltpu  # noqa: F401  (TPU backend)

# ----------------------------------------------------------------------------- config
D_MODEL = 32
N_HEADS = 4
D_HEAD = D_MODEL // N_HEADS
D_FFN = 64
VOCAB = 100
MAX_TEXT_LEN = 16
PATCH = 8
EPS = 1e-5
NEG_INF = -1e9


# ----------------------------------------------------------------------------- helpers
def _full_spec(shape):
    nd = len(shape)
    return pl.BlockSpec(shape, lambda *_: (0,) * nd)


def _round_up(n, m):
    return ((n + m - 1) // m) * m


def _pad_rows(x, mp):
    m = x.shape[0]
    if m == mp:
        return x
    return jnp.pad(x, ((0, mp - m),) + ((0, 0),) * (x.ndim - 1))


def _mxu(a, b):
    """bf16 MXU matmul with f32 accumulation."""
    return jnp.dot(a.astype(jnp.bfloat16), b.astype(jnp.bfloat16),
                   preferred_element_type=jnp.float32)


def _mxu_qkT(q, k):
    """q @ k.T on the MXU (contract last dims), bf16 in / f32 out."""
    return jax.lax.dot_general(
        q.astype(jnp.bfloat16), k.astype(jnp.bfloat16),
        (((1,), (1,)), ((), ())), preferred_element_type=jnp.float32)


def _layernorm(x, g, b, eps):
    mean = jnp.mean(x, axis=-1, keepdims=True)
    var = jnp.mean(jnp.square(x - mean), axis=-1, keepdims=True)
    return (x - mean) * jax.lax.rsqrt(var + eps) * g + b


# ----------------------------------------------------------------------------- small kernels
def _linear_kernel(x_ref, w_ref, b_ref, o_ref, *, activation):
    acc = _mxu(x_ref[...], w_ref[...]) + b_ref[...]
    if activation == "relu":
        acc = jnp.maximum(acc, 0.0)
    o_ref[...] = acc.astype(o_ref.dtype)


def pallas_linear(x, w, b, activation=None):
    """x: [M, K], w: [K, N], b: [1, N] -> [M, N] (rows padded to x8 internally)."""
    M, _ = x.shape
    _, N = w.shape
    mp = _round_up(M, 8)
    xp = _pad_rows(x, mp)
    out = pl.pallas_call(
        functools.partial(_linear_kernel, activation=activation),
        out_shape=jax.ShapeDtypeStruct((mp, N), jnp.float32),
        in_specs=[_full_spec(xp.shape), _full_spec(w.shape), _full_spec(b.shape)],
        out_specs=_full_spec((mp, N)),
    )(xp, w, b)
    return out[:M]


def _add_ln_kernel(x_ref, res_ref, g_ref, b_ref, o_ref, *, eps):
    y = x_ref[...] + res_ref[...]
    o_ref[...] = _layernorm(y, g_ref[...], b_ref[...], eps).astype(o_ref.dtype)


def pallas_add_layernorm(x, res, gamma, beta):
    """layernorm(x + res); x, res: [M, D]; gamma, beta: [1, D]."""
    M, D = x.shape
    mp = _round_up(M, 8)
    xp, rp = _pad_rows(x, mp), _pad_rows(res, mp)
    out = pl.pallas_call(
        functools.partial(_add_ln_kernel, eps=EPS),
        out_shape=jax.ShapeDtypeStruct((mp, D), jnp.float32),
        in_specs=[_full_spec(xp.shape), _full_spec(rp.shape),
                  _full_spec(gamma.shape), _full_spec(beta.shape)],
        out_specs=_full_spec((mp, D)),
    )(xp, rp, gamma, beta)
    return out[:M]


# ----------------------------------------------------------------------------- fused encoder layer
def _encoder_layer_kernel(x_ref, pos_ref, qid_ref, kid_ref,
                          wqk_ref, bqk_ref, wv_ref, bv_ref,
                          wo_ref, bo_ref, ln1_g_ref, ln1_b_ref,
                          w1_ref, b1_ref, w2_ref, b2_ref,
                          ln2_g_ref, ln2_b_ref, o_ref,
                          *, num_heads, d_head, scale, eps):
    """Whole DETR-style post-norm encoder layer in one kernel, VMEM resident.

    Rows are the flattened (seq*batch) dimension; attention batching + key padding
    is expressed with an additive mask built in-kernel from per-row/per-key id
    vectors (query attends to key iff same batch id and key not padded).
    """
    x = x_ref[...]                                   # [Mp, D] residual / V input
    qk_in = x + pos_ref[...]                         # with_pos_embed(src, pos)

    # fused Q/K projection (one matmul, 2D-wide output), V uses src only
    qk = _mxu(qk_in, wqk_ref[...]) + bqk_ref[...]    # [Mp, 2D]
    v = _mxu(x, wv_ref[...]) + bv_ref[...]           # [Mp, D]
    d = num_heads * d_head
    q = qk[:, :d]
    k = qk[:, d:2 * d]

    # additive attention mask built on the VPU (no HBM-materialized bias)
    allow = qid_ref[...] == kid_ref[...]             # [Mp,1]==[1,Mp] -> [Mp,Mp]
    bias = jnp.where(allow, 0.0, NEG_INF)

    # per-head attention (static unroll over num_heads)
    heads = []
    for h in range(num_heads):
        lo = h * d_head
        qh = q[:, lo:lo + d_head]
        kh = k[:, lo:lo + d_head]
        vh = v[:, lo:lo + d_head]
        s = _mxu_qkT(qh, kh) * scale + bias          # [Mp, Mp] f32
        m = jnp.max(s, axis=-1, keepdims=True)
        p = jnp.exp(s - m)
        p = p * pl.reciprocal(jnp.sum(p, axis=-1, keepdims=True), approx=True)
        heads.append(_mxu(p, vh))                    # [Mp, d_head]
    attn = jnp.concatenate(heads, axis=-1)           # [Mp, D]

    # output projection + add & LN1
    attn = _mxu(attn, wo_ref[...]) + bo_ref[...]
    y = _layernorm(x + attn, ln1_g_ref[...], ln1_b_ref[...], eps)

    # FFN + add & LN2
    h1 = jnp.maximum(_mxu(y, w1_ref[...]) + b1_ref[...], 0.0)
    h2 = _mxu(h1, w2_ref[...]) + b2_ref[...]
    o_ref[...] = _layernorm(y + h2, ln2_g_ref[...], ln2_b_ref[...], eps).astype(o_ref.dtype)


def transformer_encoder_layer(src, pos, key_padding_mask, p, num_heads=N_HEADS):
    """Post-norm DETR-style encoder layer. src/pos: [S, B, D] (pos may be None)."""
    S, B, D = src.shape
    M = S * B
    Mp = _round_up(M, 8)
    scale = 1.0 / float(D // num_heads) ** 0.5

    x = _pad_rows(src.reshape(M, D), Mp)
    pos_flat = (jnp.zeros_like(x) if pos is None
                else _pad_rows(pos.reshape(M, D), Mp))

    # row r = s*B + b  ->  batch id b ; padded keys get id -1 (never matches)
    bid = jnp.tile(jnp.arange(B, dtype=jnp.float32), S)          # [M]
    pad_flat = key_padding_mask.T.reshape(M)                     # [M] bool, True=pad
    kid = jnp.where(pad_flat, -1.0, bid)
    qid = jnp.pad(bid, (0, Mp - M), constant_values=-2.0).reshape(Mp, 1)
    kid = jnp.pad(kid, (0, Mp - M), constant_values=-1.0).reshape(1, Mp)

    args = (x, pos_flat, qid, kid,
            p["wqk"], p["bqk"], p["wv"], p["bv"], p["wo"], p["bo"],
            p["ln1_g"], p["ln1_b"], p["w1"], p["b1"], p["w2"], p["b2"],
            p["ln2_g"], p["ln2_b"])
    out = pl.pallas_call(
        functools.partial(_encoder_layer_kernel, num_heads=num_heads,
                          d_head=D // num_heads, scale=scale, eps=EPS),
        out_shape=jax.ShapeDtypeStruct((Mp, D), jnp.float32),
        in_specs=[_full_spec(a.shape) for a in args],
        out_specs=_full_spec((Mp, D)),
    )(*args)
    # TODO(synk): for realistic DETR-sized inputs, add a "parallel" grid axis over
    # row tiles (and online-softmax KV tiles) so v7x's second TensorCore is used and
    # the score matrix is tiled against the 64 MiB VMEM; at S*B<=24 it is pointless.
    return out[:M].reshape(S, B, D)


# ----------------------------------------------------------------------------- modules
def image_encoder(images, pixel_mask, params):
    """Patchify-conv backbone (conv expressed as one Pallas matmul).

    images: [B, C, H, W] NCHW, pixel_mask: [B, H, W] bool (True=pad).
    Returns dict(feature=[HW', B, D], mask=[B, HW'], position=[HW', B, D]).
    """
    B, C, H, W = images.shape
    gh, gw = H // PATCH, W // PATCH
    n_tok = gh * gw
    patches = images.reshape(B, C, gh, PATCH, gw, PATCH)
    patches = patches.transpose(0, 2, 4, 1, 3, 5).reshape(B * n_tok, C * PATCH * PATCH)
    feat = pallas_linear(patches, params["proj_w"], params["proj_b"])      # [B*HW', D]
    feat = feat.reshape(B, n_tok, D_MODEL).transpose(1, 0, 2)              # [HW', B, D]

    # token padded iff whole patch padded (approximation of DETR's interpolated mask)
    tok_mask = jnp.all(
        pixel_mask.reshape(B, gh, PATCH, gw, PATCH).transpose(0, 1, 3, 2, 4)
        .reshape(B, n_tok, PATCH * PATCH),
        axis=-1,
    )

    pos = jnp.broadcast_to(params["pos_embed"][:n_tok, None, :], (n_tok, B, D_MODEL))
    return {"feature": feat, "mask": tok_mask, "position": pos}


def text_encoder(token_ids, padding_mask, params):
    """BERT-ish: word emb (gather) + pos emb -> LN (fused kernel) -> 1 encoder layer.

    token_ids: [B, L] int32, padding_mask: [B, L] bool (True=pad).
    Returns dict(feature=[L, B, D], padding_mask=[B, L]).
    """
    B, L = token_ids.shape
    we = jnp.take(params["word_emb"], token_ids.reshape(-1), axis=0)       # [B*L, D] gather
    pe = jnp.tile(params["pos_emb"][:L], (B, 1))                           # [B*L, D]
    emb = pallas_add_layernorm(we, pe, params["emb_ln_g"], params["emb_ln_b"])
    x = emb.reshape(B, L, D_MODEL).transpose(1, 0, 2)                      # [L, B, D]
    x = transformer_encoder_layer(x, None, padding_mask, params["layer"], N_HEADS)
    return {"feature": x, "padding_mask": padding_mask}


def multimodal_fusion_process(img_feat, text_feat, params):
    feature_cat = jnp.concatenate([img_feat["feature"], text_feat["feature"]], axis=0)
    padding_mask_cat = jnp.concatenate([img_feat["mask"], text_feat["padding_mask"]], axis=1)
    position_cat = jnp.concatenate(
        [img_feat["position"], jnp.zeros_like(text_feat["feature"])], axis=0)
    feature = transformer_encoder_layer(
        feature_cat, position_cat, padding_mask_cat, params["fusion"], N_HEADS)
    return {"feature": feature, "position": position_cat, "padding_mask": padding_mask_cat}


def fctr_forward(params, images, pixel_mask, raw_ids, raw_pad_mask,
                 target_ids=None, target_pad_mask=None, training=False):
    visual_feat = image_encoder(images, pixel_mask, params["image"])
    raw_sent_feat = text_encoder(raw_ids, raw_pad_mask, params["text"])
    aligned_feat = multimodal_fusion_process(visual_feat, raw_sent_feat, params)

    word_emb_table = params["text"]["word_emb"]
    token_pos_table = params["token_pos_eb"]
    output = {
        "visual": visual_feat,
        "raw_sentence": raw_sent_feat,
        "aligned_feat": aligned_feat,
        # returned as callables closing over deterministic tables (stand-in for nn.Modules)
        "token_pos_embedding_fun": lambda n: token_pos_table[:n],
        "word_embeddings_fun": lambda ids: jnp.take(word_emb_table, ids, axis=0),
    }
    if training:
        # TODO(synk): target_sentences in the original are raw strings tokenized inside
        # the text encoder; here we take pre-tokenized ids.
        output["target_sentence"] = text_encoder(target_ids, target_pad_mask, params["text"])
    return output


# ----------------------------------------------------------------------------- params
def _normal(key, shape, scale=0.02):
    return scale * jax.random.normal(key, shape, jnp.float32)


def init_layer_params(key):
    ks = jax.random.split(key, 8)
    return {
        # fused Q/K projection weight ([D, 2D]); V kept separate (V input excludes pos)
        "wqk": _normal(ks[0], (D_MODEL, 2 * D_MODEL)),
        "bqk": jnp.zeros((1, 2 * D_MODEL), jnp.float32),
        "wv": _normal(ks[1], (D_MODEL, D_MODEL)),
        "bv": jnp.zeros((1, D_MODEL), jnp.float32),
        "wo": _normal(ks[2], (D_MODEL, D_MODEL)),
        "bo": jnp.zeros((1, D_MODEL), jnp.float32),
        "ln1_g": jnp.ones((1, D_MODEL), jnp.float32),
        "ln1_b": jnp.zeros((1, D_MODEL), jnp.float32),
        "ln2_g": jnp.ones((1, D_MODEL), jnp.float32),
        "ln2_b": jnp.zeros((1, D_MODEL), jnp.float32),
        "w1": _normal(ks[3], (D_MODEL, D_FFN)),
        "b1": jnp.zeros((1, D_FFN), jnp.float32),
        "w2": _normal(ks[4], (D_FFN, D_MODEL)),
        "b2": jnp.zeros((1, D_MODEL), jnp.float32),
    }


def init_params(key, n_img_tokens):
    ks = jax.random.split(key, 8)
    return {
        "image": {
            "proj_w": _normal(ks[0], (3 * PATCH * PATCH, D_MODEL)),
            "proj_b": jnp.zeros((1, D_MODEL), jnp.float32),
            "pos_embed": _normal(ks[1], (n_img_tokens, D_MODEL)),
        },
        "text": {
            "word_emb": _normal(ks[2], (VOCAB, D_MODEL)),
            "pos_emb": _normal(ks[3], (MAX_TEXT_LEN, D_MODEL)),
            "emb_ln_g": jnp.ones((1, D_MODEL), jnp.float32),
            "emb_ln_b": jnp.zeros((1, D_MODEL), jnp.float32),
            "layer": init_layer_params(ks[4]),
        },
        "fusion": init_layer_params(ks[5]),
        "token_pos_eb": _normal(ks[6], (MAX_TEXT_LEN, D_MODEL)),
    }


# ----------------------------------------------------------------------------- main
if __name__ == "__main__":
    B, C, H, W = 2, 3, 16, 16
    L = 6
    n_img_tokens = (H // PATCH) * (W // PATCH)  # 4

    key = jax.random.PRNGKey(0)
    k_img, k_ids, k_par = jax.random.split(key, 3)

    images = jax.random.normal(k_img, (B, C, H, W), jnp.float32)          # NCHW
    pixel_mask = jnp.zeros((B, H, W), jnp.bool_)                          # no padded pixels
    raw_ids = jax.random.randint(k_ids, (B, L), 0, VOCAB, jnp.int32)
    raw_pad_mask = jnp.array(
        [[False, False, False, False, False, False],
         [False, False, False, False, True, True]], dtype=jnp.bool_)

    params = init_params(k_par, n_img_tokens)

    out = fctr_forward(params, images, pixel_mask, raw_ids, raw_pad_mask, training=False)

    jax.block_until_ready(out["aligned_feat"]["feature"])
    jax.block_until_ready(out["visual"]["feature"])
    jax.block_until_ready(out["raw_sentence"]["feature"])

    assert out["visual"]["feature"].shape == (n_img_tokens, B, D_MODEL)
    assert out["raw_sentence"]["feature"].shape == (L, B, D_MODEL)
    assert out["aligned_feat"]["feature"].shape == (n_img_tokens + L, B, D_MODEL)
    assert out["aligned_feat"]["padding_mask"].shape == (B, n_img_tokens + L)
    assert bool(jnp.all(jnp.isfinite(out["aligned_feat"]["feature"])))

    print("KERNEL_OK")
</pallas_src>

<mosaic_0001>
module attributes {stable_mosaic.version = 11 : i64} {
  func.func @_linear_kernel(%arg0: memref<8x192xf32, #tpu.memory_space<vmem>>, %arg1: memref<192x32xf32, #tpu.memory_space<vmem>>, %arg2: memref<1x32xf32, #tpu.memory_space<vmem>>, %arg3: memref<8x32xf32, #tpu.memory_space<vmem>>) attributes {dimension_semantics = [], scalar_prefetch = 0 : i64, scratch_operands = 0 : i64, tpu.core_type = #tpu.core_type<tc>} {
    %c0 = arith.constant 0 : index
    %c0_0 = arith.constant 0 : index
    %0 = vector.load %arg0[%c0, %c0_0] : memref<8x192xf32, #tpu.memory_space<vmem>>, vector<8x192xf32>
    %c0_1 = arith.constant 0 : index
    %c0_2 = arith.constant 0 : index
    %1 = vector.load %arg1[%c0_1, %c0_2] : memref<192x32xf32, #tpu.memory_space<vmem>>, vector<192x32xf32>
    %2 = arith.truncf %0 : vector<8x192xf32> to vector<8x192xbf16>
    %3 = arith.truncf %1 : vector<192x32xf32> to vector<192x32xbf16>
    %cst = arith.constant dense<0.000000e+00> : vector<8x32xf32>
    %4 = tpu.matmul %2, %3, %cst {dimension_numbers = #tpu.dot_dimension_numbers<[1], [0], [0], [1], [0, 0, 1, 1], [], []>} : vector<8x192xbf16>, vector<192x32xbf16>, vector<8x32xf32> -> vector<8x32xf32>
    %c0_3 = arith.constant 0 : index
    %c0_4 = arith.constant 0 : index
    %5 = vector.load %arg2[%c0_3, %c0_4] : memref<1x32xf32, #tpu.memory_space<vmem>>, vector<1x32xf32>
    %6 = vector.broadcast %5 : vector<1x32xf32> to vector<8x32xf32>
    %7 = arith.addf %4, %6 : vector<8x32xf32>
    %c0_5 = arith.constant 0 : index
    %c0_6 = arith.constant 0 : index
    %8 = vector.load %arg3[%c0_5, %c0_6] : memref<8x32xf32, #tpu.memory_space<vmem>>, vector<8x32xf32>
    tpu.vector_store %arg3[%c0_5, %c0_6], %7 {strides = array<i32>} : memref<8x32xf32, #tpu.memory_space<vmem>>, vector<8x32xf32>,
    return
  }
}

</mosaic_0001>

<bundles_post_ra>
// kernel: tpu_custom_call.1
= control target key start
LH: loop header
LB: loop body
LE: loop exit
PB: predicated region body
PF: predicated region fallthrough
CT: control target
= control target key end

     0   :  { %v151_v3 = vmov 0   ;;  %vm63_vm0 = vcmask 523264   ;;  %s266_s0 = inlined_call_operand.vmem [shape: f32[8,192], index: 0, kind: input, shape index: {}]   ;;  %s267_s1 = inlined_call_operand.vmem [shape: f32[192,32], index: 1, kind: input, shape index: {}]   ;;  %s268_s2 = inlined_call_operand.vmem [shape: f32[1,32], index: 2, kind: input, shape index: {}]   ;;  %s269_s3 = inlined_call_operand.hbm [shape: f32[8,32], index: 3, kind: output, shape index: {}]  }
   0x1   :  { %v18_v0 = vld [vmem:[%s267_s1] sm:$0xff]  ;;  %v19_v1 = vld [vmem:[%s267_s1 + $0x8] sm:$0xff]  ;;  %v20_v2 = vld [vmem:[%s267_s1 + $0x10] sm:$0xff]  ;;  %67 = vmatprep.subr.bf16.mxu0 %v151_v3 }
   0x2   :  { %v44_v4 = vpack.c.bf16 %v19_v1, %v18_v0  ;;  %v21_v5 = vld [vmem:[%s267_s1 + $0x18] sm:$0xff]  ;;  %v22_v7 = vld [vmem:[%s267_s1 + $0x20] sm:$0xff]  ;;  %v23_v8 = vld [vmem:[%s267_s1 + $0x28] sm:$0xff] }
   0x3   :  { %v45_v6 = vpack.c.bf16 %v21_v5, %v20_v2  ;;  %v46_v9 = vpack.c.bf16 %v23_v8, %v22_v7  ;;  %v24_v10 = vld [vmem:[%s267_s1 + $0x30] sm:$0xff]  ;;  %v25_v11 = vld [vmem:[%s267_s1 + $0x38] sm:$0xff]  ;;  %v17_v12 = vld [vmem:[%s266_s0 + $0x8] sm:$0xff] }
   0x4   :  { %68 = vmatpush1.bf16.msra.mxu0 %v44_v4  ;;  %v43_v13 = vpack.c.bf16 %v17_v12, %v17_v12 }
   0x5   :  { %69 = vmatprep.subr.bf16.mxu0 %v151_v3 }
   0x8   :  { %70 = vmatpush1.bf16.msra.mxu0 %v45_v6 }
   0x9   :  { %71 = vmatprep.subr.bf16.mxu0 %v151_v3 }
   0xa   :  { %8 = vsyncpa [#allocation3], 0  ;;  %v47_v14 = vpack.c.bf16 %v25_v11, %v24_v10  ;;  %124 = vmatprep.mubr.msk.bf16.mxu0 %vm63_vm0, %v43_v13  ;;  %v26_v15 = vld [vmem:[%s267_s1 + $0x40] sm:$0xff]  ;;  %v27_v16 = vld [vmem:[%s267_s1 + $0x48] sm:$0xff]  ;;  %s152_s12 = smov [#allocation2]   ;;  %vm107_vm1 = vcmask 261120  }
   0xb   :  { %v48_v17 = vpack.c.bf16 %v27_v16, %v26_v15  ;;  %v28_v18 = vld [vmem:[%s267_s1 + $0x50] sm:$0xff]  ;;  %v29_v19 = vld [vmem:[%s267_s1 + $0x58] sm:$0xff]  ;;  %v30_v21 = vld [vmem:[%s267_s1 + $0x60] sm:$0xff]  ;;  %s115_s13 = sshll.u32 %s152_s12, 4  ;;  %s116_s13 = int_to_ptr.vmem [resolvable:$true] %s115_s13 }
   0xc   :  { %72 = vmatpush1.bf16.msra.mxu0 %v46_v9  ;;  %v49_v20 = vpack.c.bf16 %v29_v19, %v28_v18  ;;  %v31_v22 = vld [vmem:[%s267_s1 + $0x68] sm:$0xff]  ;;  %v32_v24 = vld [vmem:[%s267_s1 + $0x70] sm:$0xff]  ;;  %v33_v25 = vld [vmem:[%s267_s1 + $0x78] sm:$0xff]  ;;  %p132_p1 = scmp.lt.s32.totalorder %s116_s13, %s116_s13 }
   0xd   :  { %73 = vmatprep.subr.bf16.mxu0 %v151_v3  ;;  %v50_v23 = vpack.c.bf16 %v31_v22, %v30_v21  ;;  %v51_v26 = vpack.c.bf16 %v33_v25, %v32_v24  ;;  %v34_v27 = vld [vmem:[%s267_s1 + $0x80] sm:$0xff]  ;;  %v35_v28 = vld [vmem:[%s267_s1 + $0x88] sm:$0xff]  ;;  %v36_v30 = vld [vmem:[%s267_s1 + $0x90] sm:$0xff] }
   0xe   :  { %v52_v29 = vpack.c.bf16 %v35_v28, %v34_v27  ;;  %v37_v31 = vld [vmem:[%s267_s1 + $0x98] sm:$0xff]  ;;  %v38_v33 = vld [vmem:[%s267_s1 + $0xa0] sm:$0xff]  ;;  %v39_v34 = vld [vmem:[%s267_s1 + $0xa8] sm:$0xff] }
   0xf   :  { %v53_v32 = vpack.c.bf16 %v37_v31, %v36_v30  ;;  %v54_v35 = vpack.c.bf16 %v39_v34, %v38_v33  ;;  %v40_v36 = vld [vmem:[%s267_s1 + $0xb0] sm:$0xff]  ;;  %v41_v37 = vld [vmem:[%s267_s1 + $0xb8] sm:$0xff]  ;;  %v16_v39 = vld [vmem:[%s266_s0] sm:$0xff]  ;;  %s127_s1 = scalar_lea.vmem %s116_s13, 128 }
  0x10   :  { %74 = vmatpush1.bf16.msra.mxu0 %v47_v14  ;;  %v55_v38 = vpack.c.bf16 %v41_v37, %v40_v36  ;;  %v42_v40 = vpack.c.bf16 %v16_v39, %v16_v39  ;;  %v123_v41 = vld [vmem:[%s268_s2] ss:$0 sm:$0xff]  ;;  %p128_p0 = scmp.ne.s32.totalorder %s116_s13, %s127_s1  ;;  %p133_p2 = scmp.lt.s32.totalorder %s127_s1, %s127_s1 }
  0x11   :  { %75 = vmatprep.subr.bf16.mxu0 %v151_v3 }
  0x12   :  { %p134_p3 = por %p133_p2, %p132_p1 }
  0x14   :  { %76 = vmatpush1.bf16.msra.mxu0 %v48_v17  ;;  %p135_p4 = pnand %p134_p3, %p128_p0 }
  0x15   :  { %77 = vmatprep.subr.bf16.mxu0 %v151_v3 }
  0x18   :  { %78 = vmatpush1.bf16.msra.mxu0 %v49_v20 }
  0x19   :  { %79 = vmatprep.subr.bf16.mxu0 %v151_v3 }
  0x1c   :  { %80 = vmatpush1.bf16.msra.mxu0 %v50_v23 }
  0x1d   :  { %81 = vmatprep.subr.bf16.mxu0 %v151_v3 }
  0x20   :  { %82 = vmatpush1.bf16.msra.mxu0 %v51_v26 }
  0x21   :  { %83 = vmatprep.subr.bf16.mxu0 %v151_v3 }
  0x24   :  { %84 = vmatpush1.bf16.msra.mxu0 %v52_v29 }
  0x25   :  { %85 = vmatprep.subr.bf16.mxu0 %v151_v3 }
  0x28   :  { %86 = vmatpush1.bf16.msra.mxu0 %v53_v32 }
  0x29   :  { %87 = vmatprep.subr.bf16.mxu0 %v151_v3 }
  0x2c   :  { %88 = vmatpush1.bf16.msra.mxu0 %v54_v35 }
  0x2d   :  { %89 = vmatprep.subr.bf16.mxu0 %v151_v3 }
  0x30   :  { %90 = vmatpush1.bf16.msra.mxu0 %v55_v38 }
  0x33   :  { %100 = vmatmul.mubr.bf16.vlgmr.msra.gmra.mrb[0].mxu0 %v42_v40 }
 0x106   :  { %v101_v42 = vpop.f32.mrb[0].mxu0 }
 0x107   :  { %v102_v43 = vadd.f32 %v123_v41, %v101_v42  ;;  %v103_v44 = vpop.f32.mrb[1].mxu0 }
 0x108   :  { %v104_v45 = vpop.f32.mrb[2].mxu0 }
 0x109   :  { %v105_v46 = vpop.f32.mrb[3].mxu0  ;;  %108 = vst.msk [vmem:[#allocation2] sm:$0xff] %vm107_vm1, %v102_v43 }
 0x10a   :  { %138 = shalt.err (!%p135_p4)
}
 0x10b   :  { %s139_s2 = scalar_lea.hbm %s269_s3, 128 }
 0x10c   :  { %p140_p5 = scmp.ne.s32.totalorder %s269_s3, %s139_s2  ;;  %p143_p6 = scmp.lt.u32.totalorder %s139_s2, %s269_s3 }
 0x10e   :  { %p145_p7 = pnand %p143_p6, %p140_p5 }
 0x110   :  { %148 = shalt.err (!%p145_p7)
}
 0x111   :  { %118 = dma.vmem_to_hbm [thread:$0]  %s116_s13, 128, %s269_s3, [#allocation3]  }
 0x112   :  { %149 = dma.done.wait [#allocation3], 128  }
 0x113   :  { %150 = vsyncadd [#allocation3], 4294967168 }
 0x114   :  { %122 = vsyncpa [#allocation3], 1 }

</bundles_post_ra>
